<compile_context>
chip_gen: v7x
topology: tpu7x:2x2x1
jax: 0.10.0
libtpu: 0.0.40
codegen_flags: <defaults>
</compile_context>

<pallas_src>
import functools
import math

import jax
import jax.numpy as jnp
from jax.experimental import pallas as pl
from jax.experimental.pallas import tpu as pltpu


# ----------------------------- Pallas kernel ------------------------------- #
def rnn_block_kernel(x_ref, wih_ref, bih_ref, whh_ref, wout_ref, bout_ref,
                     out_ref):
    # x_ref:    (Bp, T*E)    batch-padded input (padded rows are zero)
    # wih_ref:  (T*E, T*4H)  block-diagonal input->gate projection
    # bih_ref:  (1,  T*4H)   (bias_ih + bias_hh) tiled per time step
    # whh_ref:  (H,  4H)     recurrent projection
    # wout_ref: (T*H, P)     fused theta->[backcast|forecast] weight, P = pad128(L+F)
    # bout_ref: (1,  P)      fused output bias (zero-padded)
    # out_ref:  (Bp, P)      lane-dense fused output [backcast | forecast | 0-pad]
    Bp = out_ref.shape[0]
    H = whh_ref.shape[0]
    G = whh_ref.shape[1]               # 4H
    T = wih_ref.shape[1] // G
    P = out_ref.shape[1]

    # Hoisted non-recurrent projection (+ bias): one MXU dot for all time steps.
    x_proj = (jnp.dot(x_ref[...], wih_ref[...],
                      preferred_element_type=jnp.float32)
              + bih_ref[...])                                      # (Bp, T*4H)

    whh = whh_ref[...]
    h = jnp.zeros((Bp, H), jnp.float32)
    c = jnp.zeros((Bp, H), jnp.float32)
    out_acc = jnp.broadcast_to(bout_ref[...], (Bp, P))             # bias folded once

    # LSTM recurrence (PyTorch gate order i, f, g, o), statically unrolled (T=8).
    for t in range(T):
        gates = x_proj[:, t * G:(t + 1) * G] + jnp.dot(
            h, whh, preferred_element_type=jnp.float32)            # (Bp, 4H)
        i_g = jax.nn.sigmoid(gates[:, 0 * H:1 * H])
        f_g = jax.nn.sigmoid(gates[:, 1 * H:2 * H])
        g_g = jnp.tanh(gates[:, 2 * H:3 * H])
        o_g = jax.nn.sigmoid(gates[:, 3 * H:4 * H])
        c = f_g * c + i_g * g_g
        h = o_g * jnp.tanh(c)
        # Distributed fused output projection (independent of the next recurrence
        # step -> off the serial critical path, fills idle MXU slots).
        out_acc = out_acc + jnp.dot(h, wout_ref[t * H:(t + 1) * H, :],
                                    preferred_element_type=jnp.float32)

    out_ref[...] = out_acc                                         # single lane-dense store


# ------------------------------ JAX wrapper -------------------------------- #
def prepare_params(params, *, embed_dim):
    """One-time weight preparation (transposes / fusions / padding)."""
    w_ih_t = params["weight_ih"].T.astype(jnp.float32)             # (E, 4H)
    w_hh_t = params["weight_hh"].T.astype(jnp.float32)             # (H, 4H)
    bias = (params["bias_ih"] + params["bias_hh"]).astype(jnp.float32)   # (4H,)
    E, G = w_ih_t.shape
    H = w_hh_t.shape[0]
    L = params["theta_b_w"].shape[1]                               # backcast_length
    T = L // embed_dim
    assert T * embed_dim == L, "context_length must be divisible by embed_dim"
    assert T * H == L, "module requires hidden_size == embed_dim"

    # Block-diagonal input projection: consumes x in native (B, T*E) layout and
    # produces all per-step gate pre-activations with one MXU dot in the kernel.
    w_ih_big = jnp.zeros((T * E, T * G), jnp.float32)
    for t in range(T):
        w_ih_big = w_ih_big.at[t * E:(t + 1) * E, t * G:(t + 1) * G].set(w_ih_t)
    b_ih = jnp.tile(bias, T).reshape(1, T * G)

    # Fully fused linear epilogue (exact: no activation between the two Linears).
    wtb_t = params["theta_b_w"].T.astype(jnp.float32)              # (L, D)
    wtf_t = params["theta_f_w"].T.astype(jnp.float32)              # (L, D)
    wbc_t = params["backcast_w"].T.astype(jnp.float32)             # (D, L)
    wfc_t = params["forecast_w"].T.astype(jnp.float32)             # (D, F)
    F_len = wfc_t.shape[1]
    w_out = jnp.concatenate([wtb_t @ wbc_t, wtf_t @ wfc_t], axis=1)  # (L, L+F)
    b_out = jnp.concatenate([params["backcast_b"],
                             params["forecast_b"]]).astype(jnp.float32)

    # Lane-dense output: pad columns to a multiple of 128 (unmasked vst).
    P = max(128, ((L + F_len + 127) // 128) * 128)
    w_out_p = jnp.zeros((L, P), jnp.float32).at[:, :L + F_len].set(w_out)
    b_out_p = jnp.zeros((1, P), jnp.float32).at[0, :L + F_len].set(b_out)

    return {
        "w_ih_big": w_ih_big,          # (T*E, T*4H)
        "b_ih": b_ih,                  # (1, T*4H)
        "w_hh_t": w_hh_t,              # (H, 4H)
        "w_out": w_out_p,              # (T*H, P)
        "b_out": b_out_p,              # (1, P)
    }


@functools.partial(jax.jit, static_argnames=("backcast_length", "forecast_length"))
def rnn_block_forward(x, prep, *, backcast_length, forecast_length):
    B = x.shape[0]
    Bp = ((B + 7) // 8) * 8            # pad batch to full 8-sublane groups
    x_p = jnp.zeros((Bp, x.shape[1]), jnp.float32).at[:B, :].set(x.astype(jnp.float32))

    P = prep["w_out"].shape[1]
    vmem = pl.BlockSpec(memory_space=pltpu.MemorySpace.VMEM)
    # TODO(synk): on v7x, add a batch (or stacked-block) grid axis with
    # dimension_semantics=("parallel",) once B is large enough to feed 2 TCs.
    out = pl.pallas_call(
        rnn_block_kernel,
        out_shape=jax.ShapeDtypeStruct((Bp, P), jnp.float32),
        in_specs=[vmem] * 6,
        out_specs=vmem,
    )(x_p, prep["w_ih_big"], prep["b_ih"], prep["w_hh_t"],
      prep["w_out"], prep["b_out"])

    backcast = out[:B, :backcast_length]
    forecast = out[:B, backcast_length:backcast_length + forecast_length]
    return backcast, forecast


# ----------------------- pure-JAX reference (checks) ----------------------- #
def ref_forward(x, params, *, embed_dim):
    B, context_length = x.shape
    T = context_length // embed_dim
    xs = x.reshape(B, T, embed_dim).astype(jnp.float32)
    H = params["weight_hh"].shape[1]
    h = jnp.zeros((B, H), jnp.float32)
    c = jnp.zeros((B, H), jnp.float32)
    b = params["bias_ih"] + params["bias_hh"]
    outs = []
    for t in range(T):
        g = xs[:, t, :] @ params["weight_ih"].T + h @ params["weight_hh"].T + b
        i_g = jax.nn.sigmoid(g[:, 0 * H:1 * H])
        f_g = jax.nn.sigmoid(g[:, 1 * H:2 * H])
        g_g = jnp.tanh(g[:, 2 * H:3 * H])
        o_g = jax.nn.sigmoid(g[:, 3 * H:4 * H])
        c = f_g * c + i_g * g_g
        h = o_g * jnp.tanh(c)
        outs.append(h)
    out_flat = jnp.concatenate(outs, axis=1)
    theta_b = out_flat @ params["theta_b_w"].T
    theta_f = out_flat @ params["theta_f_w"].T
    backcast = theta_b @ params["backcast_w"].T + params["backcast_b"]
    forecast = theta_f @ params["forecast_w"].T + params["forecast_b"]
    return backcast, forecast


# ------------------------------ param init --------------------------------- #
def init_params(key, *, thetas_dim, backcast_length, forecast_length,
                input_size, hidden_size):
    ks = jax.random.split(key, 10)
    u = lambda k, shape, bound: jax.random.uniform(
        k, shape, jnp.float32, minval=-bound, maxval=bound)
    lstm_bound = 1.0 / math.sqrt(hidden_size)
    return {
        "weight_ih": u(ks[0], (4 * hidden_size, input_size), lstm_bound),
        "weight_hh": u(ks[1], (4 * hidden_size, hidden_size), lstm_bound),
        "bias_ih":   u(ks[2], (4 * hidden_size,), lstm_bound),
        "bias_hh":   u(ks[3], (4 * hidden_size,), lstm_bound),
        "theta_b_w": u(ks[4], (thetas_dim, backcast_length), 1.0 / math.sqrt(backcast_length)),
        "theta_f_w": u(ks[5], (thetas_dim, backcast_length), 1.0 / math.sqrt(backcast_length)),
        "backcast_w": u(ks[6], (backcast_length, thetas_dim), 1.0 / math.sqrt(thetas_dim)),
        "backcast_b": u(ks[7], (backcast_length,), 1.0 / math.sqrt(thetas_dim)),
        "forecast_w": u(ks[8], (forecast_length, thetas_dim), 1.0 / math.sqrt(thetas_dim)),
        "forecast_b": u(ks[9], (forecast_length,), 1.0 / math.sqrt(thetas_dim)),
    }


if __name__ == "__main__":
    # Shapes consistent with the module defaults:
    # embed_dim = input_size = hidden_size = 8, backcast_length = 64 -> seq_len = 8
    batch = 4
    embed_dim = 8
    hidden_size = 8
    backcast_length = 64
    forecast_length = 16
    thetas_dim = 16

    key = jax.random.PRNGKey(0)
    kx, kp = jax.random.split(key)
    x = jax.random.normal(kx, (batch, backcast_length), jnp.float32)
    params = init_params(kp, thetas_dim=thetas_dim, backcast_length=backcast_length,
                         forecast_length=forecast_length, input_size=embed_dim,
                         hidden_size=hidden_size)

    prep = prepare_params(params, embed_dim=embed_dim)   # one-time weight prep

    backcast, forecast = rnn_block_forward(
        x, prep, backcast_length=backcast_length, forecast_length=forecast_length)
    jax.block_until_ready((backcast, forecast))

    bc_ref, fc_ref = ref_forward(x, params, embed_dim=embed_dim)
    assert backcast.shape == (batch, backcast_length)
    assert forecast.shape == (batch, forecast_length)
    assert jnp.allclose(backcast, bc_ref, atol=1e-4, rtol=1e-4)
    assert jnp.allclose(forecast, fc_ref, atol=1e-4, rtol=1e-4)

    print("KERNEL_OK")
</pallas_src>

<mosaic_0001>
module attributes {stable_mosaic.version = 11 : i64} {
  func.func @rnn_block_kernel(%arg0: memref<8x64xf32, #tpu.memory_space<vmem>>, %arg1: memref<64x256xf32, #tpu.memory_space<vmem>>, %arg2: memref<1x256xf32, #tpu.memory_space<vmem>>, %arg3: memref<8x32xf32, #tpu.memory_space<vmem>>, %arg4: memref<64x128xf32, #tpu.memory_space<vmem>>, %arg5: memref<1x128xf32, #tpu.memory_space<vmem>>, %arg6: memref<8x128xf32, #tpu.memory_space<vmem>>) attributes {dimension_semantics = [], scalar_prefetch = 0 : i64, scratch_operands = 0 : i64, tpu.core_type = #tpu.core_type<tc>} {
    %c0 = arith.constant 0 : index
    %c0_0 = arith.constant 0 : index
    %0 = vector.load %arg0[%c0, %c0_0] : memref<8x64xf32, #tpu.memory_space<vmem>>, vector<8x64xf32>
    %c0_1 = arith.constant 0 : index
    %c0_2 = arith.constant 0 : index
    %1 = vector.load %arg1[%c0_1, %c0_2] : memref<64x256xf32, #tpu.memory_space<vmem>>, vector<64x256xf32>
    %cst = arith.constant dense<0.000000e+00> : vector<8x256xf32>
    %2 = tpu.matmul %0, %1, %cst {dimension_numbers = #tpu.dot_dimension_numbers<[1], [0], [0], [1], [0, 0, 1, 1], [], []>} : vector<8x64xf32>, vector<64x256xf32>, vector<8x256xf32> -> vector<8x256xf32>
    %c0_3 = arith.constant 0 : index
    %c0_4 = arith.constant 0 : index
    %3 = vector.load %arg2[%c0_3, %c0_4] : memref<1x256xf32, #tpu.memory_space<vmem>>, vector<1x256xf32>
    %4 = vector.broadcast %3 : vector<1x256xf32> to vector<8x256xf32>
    %5 = arith.addf %2, %4 : vector<8x256xf32>
    %c0_5 = arith.constant 0 : index
    %c0_6 = arith.constant 0 : index
    %6 = vector.load %arg3[%c0_5, %c0_6] : memref<8x32xf32, #tpu.memory_space<vmem>>, vector<8x32xf32>
    %cst_7 = arith.constant 0.000000e+00 : f32
    %7 = vector.broadcast %cst_7 : f32 to vector<8x8xf32>
    %cst_8 = arith.constant 0.000000e+00 : f32
    %8 = vector.broadcast %cst_8 : f32 to vector<8x8xf32>
    %c0_9 = arith.constant 0 : index
    %c0_10 = arith.constant 0 : index
    %9 = vector.load %arg5[%c0_9, %c0_10] : memref<1x128xf32, #tpu.memory_space<vmem>>, vector<1x128xf32>
    %10 = vector.shape_cast %9 : vector<1x128xf32> to vector<1x128xf32>
    %11 = vector.broadcast %10 : vector<1x128xf32> to vector<8x128xf32>
    %12 = vector.extract_strided_slice %5 {offsets = [0, 0], sizes = [8, 32], strides = [1, 1]} : vector<8x256xf32> to vector<8x32xf32>
    %cst_11 = arith.constant dense<0.000000e+00> : vector<8x32xf32>
    %13 = tpu.matmul %7, %6, %cst_11 {dimension_numbers = #tpu.dot_dimension_numbers<[1], [0], [0], [1], [0, 0, 1, 1], [], []>} : vector<8x8xf32>, vector<8x32xf32>, vector<8x32xf32> -> vector<8x32xf32>
    %14 = arith.addf %12, %13 : vector<8x32xf32>
    %15 = vector.extract_strided_slice %14 {offsets = [0, 0], sizes = [8, 8], strides = [1, 1]} : vector<8x32xf32> to vector<8x8xf32>
    %16 = arith.negf %15 : vector<8x8xf32>
    %17 = math.exp %16 : vector<8x8xf32>
    %cst_12 = arith.constant 1.000000e+00 : f32
    %18 = vector.broadcast %cst_12 : f32 to vector<8x8xf32>
    %19 = arith.addf %18, %17 : vector<8x8xf32>
    %20 = arith.divf %18, %19 : vector<8x8xf32>
    %21 = vector.extract_strided_slice %14 {offsets = [0, 8], sizes = [8, 8], strides = [1, 1]} : vector<8x32xf32> to vector<8x8xf32>
    %22 = arith.negf %21 : vector<8x8xf32>
    %23 = math.exp %22 : vector<8x8xf32>
    %cst_13 = arith.constant 1.000000e+00 : f32
    %24 = vector.broadcast %cst_13 : f32 to vector<8x8xf32>
    %25 = arith.addf %24, %23 : vector<8x8xf32>
    %26 = arith.divf %24, %25 : vector<8x8xf32>
    %27 = vector.extract_strided_slice %14 {offsets = [0, 16], sizes = [8, 8], strides = [1, 1]} : vector<8x32xf32> to vector<8x8xf32>
    %28 = math.tanh %27 : vector<8x8xf32>
    %29 = vector.extract_strided_slice %14 {offsets = [0, 24], sizes = [8, 8], strides = [1, 1]} : vector<8x32xf32> to vector<8x8xf32>
    %30 = arith.negf %29 : vector<8x8xf32>
    %31 = math.exp %30 : vector<8x8xf32>
    %cst_14 = arith.constant 1.000000e+00 : f32
    %32 = vector.broadcast %cst_14 : f32 to vector<8x8xf32>
    %33 = arith.addf %32, %31 : vector<8x8xf32>
    %34 = arith.divf %32, %33 : vector<8x8xf32>
    %35 = arith.mulf %26, %8 : vector<8x8xf32>
    %36 = arith.mulf %20, %28 : vector<8x8xf32>
    %37 = arith.addf %35, %36 : vector<8x8xf32>
    %38 = math.tanh %37 : vector<8x8xf32>
    %39 = arith.mulf %34, %38 : vector<8x8xf32>
    %c0_15 = arith.constant 0 : index
    %c0_16 = arith.constant 0 : index
    %40 = vector.load %arg4[%c0_15, %c0_16] : memref<64x128xf32, #tpu.memory_space<vmem>>, vector<8x128xf32>
    %cst_17 = arith.constant dense<0.000000e+00> : vector<8x128xf32>
    %41 = tpu.matmul %39, %40, %cst_17 {dimension_numbers = #tpu.dot_dimension_numbers<[1], [0], [0], [1], [0, 0, 1, 1], [], []>} : vector<8x8xf32>, vector<8x128xf32>, vector<8x128xf32> -> vector<8x128xf32>
    %42 = arith.addf %11, %41 : vector<8x128xf32>
    %43 = vector.extract_strided_slice %5 {offsets = [0, 32], sizes = [8, 32], strides = [1, 1]} : vector<8x256xf32> to vector<8x32xf32>
    %cst_18 = arith.constant dense<0.000000e+00> : vector<8x32xf32>
    %44 = tpu.matmul %39, %6, %cst_18 {dimension_numbers = #tpu.dot_dimension_numbers<[1], [0], [0], [1], [0, 0, 1, 1], [], []>} : vector<8x8xf32>, vector<8x32xf32>, vector<8x32xf32> -> vector<8x32xf32>
    %45 = arith.addf %43, %44 : vector<8x32xf32>
    %46 = vector.extract_strided_slice %45 {offsets = [0, 0], sizes = [8, 8], strides = [1, 1]} : vector<8x32xf32> to vector<8x8xf32>
    %47 = arith.negf %46 : vector<8x8xf32>
    %48 = math.exp %47 : vector<8x8xf32>
    %cst_19 = arith.constant 1.000000e+00 : f32
    %49 = vector.broadcast %cst_19 : f32 to vector<8x8xf32>
    %50 = arith.addf %49, %48 : vector<8x8xf32>
    %51 = arith.divf %49, %50 : vector<8x8xf32>
    %52 = vector.extract_strided_slice %45 {offsets = [0, 8], sizes = [8, 8], strides = [1, 1]} : vector<8x32xf32> to vector<8x8xf32>
    %53 = arith.negf %52 : vector<8x8xf32>
    %54 = math.exp %53 : vector<8x8xf32>
    %cst_20 = arith.constant 1.000000e+00 : f32
    %55 = vector.broadcast %cst_20 : f32 to vector<8x8xf32>
    %56 = arith.addf %55, %54 : vector<8x8xf32>
    %57 = arith.divf %55, %56 : vector<8x8xf32>
    %58 = vector.extract_strided_slice %45 {offsets = [0, 16], sizes = [8, 8], strides = [1, 1]} : vector<8x32xf32> to vector<8x8xf32>
    %59 = math.tanh %58 : vector<8x8xf32>
    %60 = vector.extract_strided_slice %45 {offsets = [0, 24], sizes = [8, 8], strides = [1, 1]} : vector<8x32xf32> to vector<8x8xf32>
    %61 = arith.negf %60 : vector<8x8xf32>
    %62 = math.exp %61 : vector<8x8xf32>
    %cst_21 = arith.constant 1.000000e+00 : f32
    %63 = vector.broadcast %cst_21 : f32 to vector<8x8xf32>
    %64 = arith.addf %63, %62 : vector<8x8xf32>
    %65 = arith.divf %63, %64 : vector<8x8xf32>
    %66 = arith.mulf %57, %37 : vector<8x8xf32>
    %67 = arith.mulf %51, %59 : vector<8x8xf32>
    %68 = arith.addf %66, %67 : vector<8x8xf32>
    %69 = math.tanh %68 : vector<8x8xf32>
    %70 = arith.mulf %65, %69 : vector<8x8xf32>
    %c8 = arith.constant 8 : index
    %c0_22 = arith.constant 0 : index
    %71 = vector.load %arg4[%c8, %c0_22] : memref<64x128xf32, #tpu.memory_space<vmem>>, vector<8x128xf32>
    %cst_23 = arith.constant dense<0.000000e+00> : vector<8x128xf32>
    %72 = tpu.matmul %70, %71, %cst_23 {dimension_numbers = #tpu.dot_dimension_numbers<[1], [0], [0], [1], [0, 0, 1, 1], [], []>} : vector<8x8xf32>, vector<8x128xf32>, vector<8x128xf32> -> vector<8x128xf32>
    %73 = arith.addf %42, %72 : vector<8x128xf32>
    %74 = vector.extract_strided_slice %5 {offsets = [0, 64], sizes = [8, 32], strides = [1, 1]} : vector<8x256xf32> to vector<8x32xf32>
    %cst_24 = arith.constant dense<0.000000e+00> : vector<8x32xf32>
    %75 = tpu.matmul %70, %6, %cst_24 {dimension_numbers = #tpu.dot_dimension_numbers<[1], [0], [0], [1], [0, 0, 1, 1], [], []>} : vector<8x8xf32>, vector<8x32xf32>, vector<8x32xf32> -> vector<8x32xf32>
    %76 = arith.addf %74, %75 : vector<8x32xf32>
    %77 = vector.extract_strided_slice %76 {offsets = [0, 0], sizes = [8, 8], strides = [1, 1]} : vector<8x32xf32> to vector<8x8xf32>
    %78 = arith.negf %77 : vector<8x8xf32>
    %79 = math.exp %78 : vector<8x8xf32>
    %cst_25 = arith.constant 1.000000e+00 : f32
    %80 = vector.broadcast %cst_25 : f32 to vector<8x8xf32>
    %81 = arith.addf %80, %79 : vector<8x8xf32>
    %82 = arith.divf %80, %81 : vector<8x8xf32>
    %83 = vector.extract_strided_slice %76 {offsets = [0, 8], sizes = [8, 8], strides = [1, 1]} : vector<8x32xf32> to vector<8x8xf32>
    %84 = arith.negf %83 : vector<8x8xf32>
    %85 = math.exp %84 : vector<8x8xf32>
    %cst_26 = arith.constant 1.000000e+00 : f32
    %86 = vector.broadcast %cst_26 : f32 to vector<8x8xf32>
    %87 = arith.addf %86, %85 : vector<8x8xf32>
    %88 = arith.divf %86, %87 : vector<8x8xf32>
    %89 = vector.extract_strided_slice %76 {offsets = [0, 16], sizes = [8, 8], strides = [1, 1]} : vector<8x32xf32> to vector<8x8xf32>
    %90 = math.tanh %89 : vector<8x8xf32>
    %91 = vector.extract_strided_slice %76 {offsets = [0, 24], sizes = [8, 8], strides = [1, 1]} : vector<8x32xf32> to vector<8x8xf32>
    %92 = arith.negf %91 : vector<8x8xf32>
    %93 = math.exp %92 : vector<8x8xf32>
    %cst_27 = arith.constant 1.000000e+00 : f32
    %94 = vector.broadcast %cst_27 : f32 to vector<8x8xf32>
    %95 = arith.addf %94, %93 : vector<8x8xf32>
    %96 = arith.divf %94, %95 : vector<8x8xf32>
    %97 = arith.mulf %88, %68 : vector<8x8xf32>
    %98 = arith.mulf %82, %90 : vector<8x8xf32>
    %99 = arith.addf %97, %98 : vector<8x8xf32>
    %100 = math.tanh %99 : vector<8x8xf32>
    %101 = arith.mulf %96, %100 : vector<8x8xf32>
    %c16 = arith.constant 16 : index
    %c0_28 = arith.constant 0 : index
    %102 = vector.load %arg4[%c16, %c0_28] : memref<64x128xf32, #tpu.memory_space<vmem>>, vector<8x128xf32>
    %cst_29 = arith.constant dense<0.000000e+00> : vector<8x128xf32>
    %103 = tpu.matmul %101, %102, %cst_29 {dimension_numbers = #tpu.dot_dimension_numbers<[1], [0], [0], [1], [0, 0, 1, 1], [], []>} : vector<8x8xf32>, vector<8x128xf32>, vector<8x128xf32> -> vector<8x128xf32>
    %104 = arith.addf %73, %103 : vector<8x128xf32>
    %105 = vector.extract_strided_slice %5 {offsets = [0, 96], sizes = [8, 32], strides = [1, 1]} : vector<8x256xf32> to vector<8x32xf32>
    %cst_30 = arith.constant dense<0.000000e+00> : vector<8x32xf32>
    %106 = tpu.matmul %101, %6, %cst_30 {dimension_numbers = #tpu.dot_dimension_numbers<[1], [0], [0], [1], [0, 0, 1, 1], [], []>} : vector<8x8xf32>, vector<8x32xf32>, vector<8x32xf32> -> vector<8x32xf32>
    %107 = arith.addf %105, %106 : vector<8x32xf32>
    %108 = vector.extract_strided_slice %107 {offsets = [0, 0], sizes = [8, 8], strides = [1, 1]} : vector<8x32xf32> to vector<8x8xf32>
    %109 = arith.negf %108 : vector<8x8xf32>
    %110 = math.exp %109 : vector<8x8xf32>
    %cst_31 = arith.constant 1.000000e+00 : f32
    %111 = vector.broadcast %cst_31 : f32 to vector<8x8xf32>
    %112 = arith.addf %111, %110 : vector<8x8xf32>
    %113 = arith.divf %111, %112 : vector<8x8xf32>
    %114 = vector.extract_strided_slice %107 {offsets = [0, 8], sizes = [8, 8], strides = [1, 1]} : vector<8x32xf32> to vector<8x8xf32>
    %115 = arith.negf %114 : vector<8x8xf32>
    %116 = math.exp %115 : vector<8x8xf32>
    %cst_32 = arith.constant 1.000000e+00 : f32
    %117 = vector.broadcast %cst_32 : f32 to vector<8x8xf32>
    %118 = arith.addf %117, %116 : vector<8x8xf32>
    %119 = arith.divf %117, %118 : vector<8x8xf32>
    %120 = vector.extract_strided_slice %107 {offsets = [0, 16], sizes = [8, 8], strides = [1, 1]} : vector<8x32xf32> to vector<8x8xf32>
    %121 = math.tanh %120 : vector<8x8xf32>
    %122 = vector.extract_strided_slice %107 {offsets = [0, 24], sizes = [8, 8], strides = [1, 1]} : vector<8x32xf32> to vector<8x8xf32>
    %123 = arith.negf %122 : vector<8x8xf32>
    %124 = math.exp %123 : vector<8x8xf32>
    %cst_33 = arith.constant 1.000000e+00 : f32
    %125 = vector.broadcast %cst_33 : f32 to vector<8x8xf32>
    %126 = arith.addf %125, %124 : vector<8x8xf32>
    %127 = arith.divf %125, %126 : vector<8x8xf32>
    %128 = arith.mulf %119, %99 : vector<8x8xf32>
    %129 = arith.mulf %113, %121 : vector<8x8xf32>
    %130 = arith.addf %128, %129 : vector<8x8xf32>
    %131 = math.tanh %130 : vector<8x8xf32>
    %132 = arith.mulf %127, %131 : vector<8x8xf32>
    %c24 = arith.constant 24 : index
    %c0_34 = arith.constant 0 : index
    %133 = vector.load %arg4[%c24, %c0_34] : memref<64x128xf32, #tpu.memory_space<vmem>>, vector<8x128xf32>
    %cst_35 = arith.constant dense<0.000000e+00> : vector<8x128xf32>
    %134 = tpu.matmul %132, %133, %cst_35 {dimension_numbers = #tpu.dot_dimension_numbers<[1], [0], [0], [1], [0, 0, 1, 1], [], []>} : vector<8x8xf32>, vector<8x128xf32>, vector<8x128xf32> -> vector<8x128xf32>
    %135 = arith.addf %104, %134 : vector<8x128xf32>
    %136 = vector.extract_strided_slice %5 {offsets = [0, 128], sizes = [8, 32], strides = [1, 1]} : vector<8x256xf32> to vector<8x32xf32>
    %cst_36 = arith.constant dense<0.000000e+00> : vector<8x32xf32>
    %137 = tpu.matmul %132, %6, %cst_36 {dimension_numbers = #tpu.dot_dimension_numbers<[1], [0], [0], [1], [0, 0, 1, 1], [], []>} : vector<8x8xf32>, vector<8x32xf32>, vector<8x32xf32> -> vector<8x32xf32>
    %138 = arith.addf %136, %137 : vector<8x32xf32>
    %139 = vector.extract_strided_slice %138 {offsets = [0, 0], sizes = [8, 8], strides = [1, 1]} : vector<8x32xf32> to vector<8x8xf32>
    %140 = arith.negf %139 : vector<8x8xf32>
    %141 = math.exp %140 : vector<8x8xf32>
    %cst_37 = arith.constant 1.000000e+00 : f32
    %142 = vector.broadcast %cst_37 : f32 to vector<8x8xf32>
    %143 = arith.addf %142, %141 : vector<8x8xf32>
    %144 = arith.divf %142, %143 : vector<8x8xf32>
    %145 = vector.extract_strided_slice %138 {offsets = [0, 8], sizes = [8, 8], strides = [1, 1]} : vector<8x32xf32> to vector<8x8xf32>
    %146 = arith.negf %145 : vector<8x8xf32>
    %147 = math.exp %146 : vector<8x8xf32>
    %cst_38 = arith.constant 1.000000e+00 : f32
    %148 = vector.broadcast %cst_38 : f32 to vector<8x8xf32>
    %149 = arith.addf %148, %147 : vector<8x8xf32>
    %150 = arith.divf %148, %149 : vector<8x8xf32>
    %151 = vector.extract_strided_slice %138 {offsets = [0, 16], sizes = [8, 8], strides = [1, 1]} : vector<8x32xf32> to vector<8x8xf32>
    %152 = math.tanh %151 : vector<8x8xf32>
    %153 = vector.extract_strided_slice %138 {offsets = [0, 24], sizes = [8, 8], strides = [1, 1]} : vector<8x32xf32> to vector<8x8xf32>
    %154 = arith.negf %153 : vector<8x8xf32>
    %155 = math.exp %154 : vector<8x8xf32>
    %cst_39 = arith.constant 1.000000e+00 : f32
    %156 = vector.broadcast %cst_39 : f32 to vector<8x8xf32>
    %157 = arith.addf %156, %155 : vector<8x8xf32>
    %158 = arith.divf %156, %157 : vector<8x8xf32>
    %159 = arith.mulf %150, %130 : vector<8x8xf32>
    %160 = arith.mulf %144, %152 : vector<8x8xf32>
    %161 = arith.addf %159, %160 : vector<8x8xf32>
    %162 = math.tanh %161 : vector<8x8xf32>
    %163 = arith.mulf %158, %162 : vector<8x8xf32>
    %c32 = arith.constant 32 : index
    %c0_40 = arith.constant 0 : index
    %164 = vector.load %arg4[%c32, %c0_40] : memref<64x128xf32, #tpu.memory_space<vmem>>, vector<8x128xf32>
    %cst_41 = arith.constant dense<0.000000e+00> : vector<8x128xf32>
    %165 = tpu.matmul %163, %164, %cst_41 {dimension_numbers = #tpu.dot_dimension_numbers<[1], [0], [0], [1], [0, 0, 1, 1], [], []>} : vector<8x8xf32>, vector<8x128xf32>, vector<8x128xf32> -> vector<8x128xf32>
    %166 = arith.addf %135, %165 : vector<8x128xf32>
    %167 = vector.extract_strided_slice %5 {offsets = [0, 160], sizes = [8, 32], strides = [1, 1]} : vector<8x256xf32> to vector<8x32xf32>
    %cst_42 = arith.constant dense<0.000000e+00> : vector<8x32xf32>
    %168 = tpu.matmul %163, %6, %cst_42 {dimension_numbers = #tpu.dot_dimension_numbers<[1], [0], [0], [1], [0, 0, 1, 1], [], []>} : vector<8x8xf32>, vector<8x32xf32>, vector<8x32xf32> -> vector<8x32xf32>
    %169 = arith.addf %167, %168 : vector<8x32xf32>
    %170 = vector.extract_strided_slice %169 {offsets = [0, 0], sizes = [8, 8], strides = [1, 1]} : vector<8x32xf32> to vector<8x8xf32>
    %171 = arith.negf %170 : vector<8x8xf32>
    %172 = math.exp %171 : vector<8x8xf32>
    %cst_43 = arith.constant 1.000000e+00 : f32
    %173 = vector.broadcast %cst_43 : f32 to vector<8x8xf32>
    %174 = arith.addf %173, %172 : vector<8x8xf32>
    %175 = arith.divf %173, %174 : vector<8x8xf32>
    %176 = vector.extract_strided_slice %169 {offsets = [0, 8], sizes = [8, 8], strides = [1, 1]} : vector<8x32xf32> to vector<8x8xf32>
    %177 = arith.negf %176 : vector<8x8xf32>
    %178 = math.exp %177 : vector<8x8xf32>
    %cst_44 = arith.constant 1.000000e+00 : f32
    %179 = vector.broadcast %cst_44 : f32 to vector<8x8xf32>
    %180 = arith.addf %179, %178 : vector<8x8xf32>
    %181 = arith.divf %179, %180 : vector<8x8xf32>
    %182 = vector.extract_strided_slice %169 {offsets = [0, 16], sizes = [8, 8], strides = [1, 1]} : vector<8x32xf32> to vector<8x8xf32>
    %183 = math.tanh %182 : vector<8x8xf32>
    %184 = vector.extract_strided_slice %169 {offsets = [0, 24], sizes = [8, 8], strides = [1, 1]} : vector<8x32xf32> to vector<8x8xf32>
    %185 = arith.negf %184 : vector<8x8xf32>
    %186 = math.exp %185 : vector<8x8xf32>
    %cst_45 = arith.constant 1.000000e+00 : f32
    %187 = vector.broadcast %cst_45 : f32 to vector<8x8xf32>
    %188 = arith.addf %187, %186 : vector<8x8xf32>
    %189 = arith.divf %187, %188 : vector<8x8xf32>
    %190 = arith.mulf %181, %161 : vector<8x8xf32>
    %191 = arith.mulf %175, %183 : vector<8x8xf32>
    %192 = arith.addf %190, %191 : vector<8x8xf32>
    %193 = math.tanh %192 : vector<8x8xf32>
    %194 = arith.mulf %189, %193 : vector<8x8xf32>
    %c40 = arith.constant 40 : index
    %c0_46 = arith.constant 0 : index
    %195 = vector.load %arg4[%c40, %c0_46] : memref<64x128xf32, #tpu.memory_space<vmem>>, vector<8x128xf32>
    %cst_47 = arith.constant dense<0.000000e+00> : vector<8x128xf32>
    %196 = tpu.matmul %194, %195, %cst_47 {dimension_numbers = #tpu.dot_dimension_numbers<[1], [0], [0], [1], [0, 0, 1, 1], [], []>} : vector<8x8xf32>, vector<8x128xf32>, vector<8x128xf32> -> vector<8x128xf32>
    %197 = arith.addf %166, %196 : vector<8x128xf32>
    %198 = vector.extract_strided_slice %5 {offsets = [0, 192], sizes = [8, 32], strides = [1, 1]} : vector<8x256xf32> to vector<8x32xf32>
    %cst_48 = arith.constant dense<0.000000e+00> : vector<8x32xf32>
    %199 = tpu.matmul %194, %6, %cst_48 {dimension_numbers = #tpu.dot_dimension_numbers<[1], [0], [0], [1], [0, 0, 1, 1], [], []>} : vector<8x8xf32>, vector<8x32xf32>, vector<8x32xf32> -> vector<8x32xf32>
    %200 = arith.addf %198, %199 : vector<8x32xf32>
    %201 = vector.extract_strided_slice %200 {offsets = [0, 0], sizes = [8, 8], strides = [1, 1]} : vector<8x32xf32> to vector<8x8xf32>
    %202 = arith.negf %201 : vector<8x8xf32>
    %203 = math.exp %202 : vector<8x8xf32>
    %cst_49 = arith.constant 1.000000e+00 : f32
    %204 = vector.broadcast %cst_49 : f32 to vector<8x8xf32>
    %205 = arith.addf %204, %203 : vector<8x8xf32>
    %206 = arith.divf %204, %205 : vector<8x8xf32>
    %207 = vector.extract_strided_slice %200 {offsets = [0, 8], sizes = [8, 8], strides = [1, 1]} : vector<8x32xf32> to vector<8x8xf32>
    %208 = arith.negf %207 : vector<8x8xf32>
    %209 = math.exp %208 : vector<8x8xf32>
    %cst_50 = arith.constant 1.000000e+00 : f32
    %210 = vector.broadcast %cst_50 : f32 to vector<8x8xf32>
    %211 = arith.addf %210, %209 : vector<8x8xf32>
    %212 = arith.divf %210, %211 : vector<8x8xf32>
    %213 = vector.extract_strided_slice %200 {offsets = [0, 16], sizes = [8, 8], strides = [1, 1]} : vector<8x32xf32> to vector<8x8xf32>
    %214 = math.tanh %213 : vector<8x8xf32>
    %215 = vector.extract_strided_slice %200 {offsets = [0, 24], sizes = [8, 8], strides = [1, 1]} : vector<8x32xf32> to vector<8x8xf32>
    %216 = arith.negf %215 : vector<8x8xf32>
    %217 = math.exp %216 : vector<8x8xf32>
    %cst_51 = arith.constant 1.000000e+00 : f32
    %218 = vector.broadcast %cst_51 : f32 to vector<8x8xf32>
    %219 = arith.addf %218, %217 : vector<8x8xf32>
    %220 = arith.divf %218, %219 : vector<8x8xf32>
    %221 = arith.mulf %212, %192 : vector<8x8xf32>
    %222 = arith.mulf %206, %214 : vector<8x8xf32>
    %223 = arith.addf %221, %222 : vector<8x8xf32>
    %224 = math.tanh %223 : vector<8x8xf32>
    %225 = arith.mulf %220, %224 : vector<8x8xf32>
    %c48 = arith.constant 48 : index
    %c0_52 = arith.constant 0 : index
    %226 = vector.load %arg4[%c48, %c0_52] : memref<64x128xf32, #tpu.memory_space<vmem>>, vector<8x128xf32>
    %cst_53 = arith.constant dense<0.000000e+00> : vector<8x128xf32>
    %227 = tpu.matmul %225, %226, %cst_53 {dimension_numbers = #tpu.dot_dimension_numbers<[1], [0], [0], [1], [0, 0, 1, 1], [], []>} : vector<8x8xf32>, vector<8x128xf32>, vector<8x128xf32> -> vector<8x128xf32>
    %228 = arith.addf %197, %227 : vector<8x128xf32>
    %229 = vector.extract_strided_slice %5 {offsets = [0, 224], sizes = [8, 32], strides = [1, 1]} : vector<8x256xf32> to vector<8x32xf32>
    %cst_54 = arith.constant dense<0.000000e+00> : vector<8x32xf32>
    %230 = tpu.matmul %225, %6, %cst_54 {dimension_numbers = #tpu.dot_dimension_numbers<[1], [0], [0], [1], [0, 0, 1, 1], [], []>} : vector<8x8xf32>, vector<8x32xf32>, vector<8x32xf32> -> vector<8x32xf32>
    %231 = arith.addf %229, %230 : vector<8x32xf32>
    %232 = vector.extract_strided_slice %231 {offsets = [0, 0], sizes = [8, 8], strides = [1, 1]} : vector<8x32xf32> to vector<8x8xf32>
    %233 = arith.negf %232 : vector<8x8xf32>
    %234 = math.exp %233 : vector<8x8xf32>
    %cst_55 = arith.constant 1.000000e+00 : f32
    %235 = vector.broadcast %cst_55 : f32 to vector<8x8xf32>
    %236 = arith.addf %235, %234 : vector<8x8xf32>
    %237 = arith.divf %235, %236 : vector<8x8xf32>
    %238 = vector.extract_strided_slice %231 {offsets = [0, 8], sizes = [8, 8], strides = [1, 1]} : vector<8x32xf32> to vector<8x8xf32>
    %239 = arith.negf %238 : vector<8x8xf32>
    %240 = math.exp %239 : vector<8x8xf32>
    %cst_56 = arith.constant 1.000000e+00 : f32
    %241 = vector.broadcast %cst_56 : f32 to vector<8x8xf32>
    %242 = arith.addf %241, %240 : vector<8x8xf32>
    %243 = arith.divf %241, %242 : vector<8x8xf32>
    %244 = vector.extract_strided_slice %231 {offsets = [0, 16], sizes = [8, 8], strides = [1, 1]} : vector<8x32xf32> to vector<8x8xf32>
    %245 = math.tanh %244 : vector<8x8xf32>
    %246 = vector.extract_strided_slice %231 {offsets = [0, 24], sizes = [8, 8], strides = [1, 1]} : vector<8x32xf32> to vector<8x8xf32>
    %247 = arith.negf %246 : vector<8x8xf32>
    %248 = math.exp %247 : vector<8x8xf32>
    %cst_57 = arith.constant 1.000000e+00 : f32
    %249 = vector.broadcast %cst_57 : f32 to vector<8x8xf32>
    %250 = arith.addf %249, %248 : vector<8x8xf32>
    %251 = arith.divf %249, %250 : vector<8x8xf32>
    %252 = arith.mulf %243, %223 : vector<8x8xf32>
    %253 = arith.mulf %237, %245 : vector<8x8xf32>
    %254 = arith.addf %252, %253 : vector<8x8xf32>
    %255 = math.tanh %254 : vector<8x8xf32>
    %256 = arith.mulf %251, %255 : vector<8x8xf32>
    %c56 = arith.constant 56 : index
    %c0_58 = arith.constant 0 : index
    %257 = vector.load %arg4[%c56, %c0_58] : memref<64x128xf32, #tpu.memory_space<vmem>>, vector<8x128xf32>
    %cst_59 = arith.constant dense<0.000000e+00> : vector<8x128xf32>
    %258 = tpu.matmul %256, %257, %cst_59 {dimension_numbers = #tpu.dot_dimension_numbers<[1], [0], [0], [1], [0, 0, 1, 1], [], []>} : vector<8x8xf32>, vector<8x128xf32>, vector<8x128xf32> -> vector<8x128xf32>
    %259 = arith.addf %228, %258 : vector<8x128xf32>
    %c0_60 = arith.constant 0 : index
    %c0_61 = arith.constant 0 : index
    %260 = vector.load %arg6[%c0_60, %c0_61] : memref<8x128xf32, #tpu.memory_space<vmem>>, vector<8x128xf32>
    tpu.vector_store %arg6[%c0_60, %c0_61], %259 {strides = array<i32>} : memref<8x128xf32, #tpu.memory_space<vmem>>, vector<8x128xf32>,
    return
  }
}

</mosaic_0001>

<bundles_post_ra>
// kernel: rnn_block_forward.1
= control target key start
LH: loop header
LB: loop body
LE: loop exit
PB: predicated region body
PF: predicated region fallthrough
CT: control target
= control target key end

     0   :  { %11 = vsyncpa [#allocation3], 0  ;;  %s2131_s0 = inlined_call_operand.vmem [shape: f32[8,64], index: 0, kind: input, shape index: {}]   ;;  %s2132_s1 = inlined_call_operand.hbm [shape: f32[64,256], index: 1, kind: input, shape index: {}]   ;;  %s2133_s2 = inlined_call_operand.vmem [shape: f32[1,256], index: 2, kind: input, shape index: {}]   ;;  %s2134_s3 = inlined_call_operand.vmem [shape: f32[8,32], index: 3, kind: input, shape index: {}]   ;;  %s2135_s4 = inlined_call_operand.hbm [shape: f32[64,128], index: 4, kind: input, shape index: {}]   ;;  %s2136_s5 = inlined_call_operand.vmem [shape: f32[1,128], index: 5, kind: input, shape index: {}]   ;;  %s2137_s6 = inlined_call_operand.vmem [shape: f32[8,128], index: 6, kind: output, shape index: {}]  }
   0x1   :  { %12 = vsyncpa [#allocation5], 0  ;;  %s1897_s21 = smov [#allocation2]   ;;  %s1849_s25 = scalar_lea.hbm %s2132_s1, 2048 }
   0x2   :  { %s20_s22 = sshll.u32 %s1897_s21, 4  ;;  %p1850_p0 = scmp.ne.s32.totalorder %s2132_s1, %s1849_s25  ;;  %s21_s22 = int_to_ptr.vmem [resolvable:$true] %s20_s22 }
   0x3   :  { %p1853_p1 = scmp.lt.u32.totalorder %s1849_s25, %s2132_s1 }
   0x5   :  { %p1855_p2 = pnand %p1853_p1, %p1850_p0 }
   0x7   :  { %1858 = shalt.err (!%p1855_p2)
}
   0x8   :  { %s1859_s30 = scalar_lea.vmem %s21_s22, 2048  ;;  %p1864_p4 = scmp.lt.s32.totalorder %s21_s22, %s21_s22 }
   0x9   :  { %p1860_p3 = scmp.ne.s32.totalorder %s21_s22, %s1859_s30  ;;  %p1865_p5 = scmp.lt.s32.totalorder %s1859_s30, %s1859_s30 }
   0xb   :  { %p1866_p6 = por %p1865_p5, %p1864_p4 }
   0xd   :  { %p1867_p7 = pnand %p1866_p6, %p1860_p3 }
   0xf   :  { %1870 = shalt.err (!%p1867_p7)
}
  0x10   :  { %s1898_s7 = smov 256   ;;  %s1899_s8 = smov 16  }
  0x11   :  { %26 = dma.hbm_to_vmem [thread:$0]  %s2132_s1, 2048, %s21_s22, [#allocation3], %s1898_s7, %s1898_s7, %s1899_s8  }
  0x12   :  { %s1900_s11 = smov [#allocation4]   ;;  %s1871_s15 = scalar_lea.hbm %s2135_s4, 1024 }
  0x13   :  { %s36_s12 = sshll.u32 %s1900_s11, 4  ;;  %p1872_p8 = scmp.ne.s32.totalorder %s2135_s4, %s1871_s15  ;;  %s37_s12 = int_to_ptr.vmem [resolvable:$true] %s36_s12 }
  0x14   :  { %p1875_p9 = scmp.lt.u32.totalorder %s1871_s15, %s2135_s4 }
  0x16   :  { %p1877_p10 = pnand %p1875_p9, %p1872_p8 }
  0x18   :  { %1880 = shalt.err (!%p1877_p10)
}
  0x19   :  { %s1881_s20 = scalar_lea.vmem %s37_s12, 1024  ;;  %p1886_p12 = scmp.lt.s32.totalorder %s37_s12, %s37_s12 }
  0x1a   :  { %p1882_p11 = scmp.ne.s32.totalorder %s37_s12, %s1881_s20  ;;  %p1887_p13 = scmp.lt.s32.totalorder %s1881_s20, %s1881_s20 }
  0x1c   :  { %p1888_p0 = por %p1887_p13, %p1886_p12 }
  0x1e   :  { %p1889_p1 = pnand %p1888_p0, %p1882_p11 }
  0x20   :  { %1892 = shalt.err (!%p1889_p1)
}
  0x21   :  { %s1901_s1 = smov 128   ;;  %s1902_s21 = smov 8  }
  0x22   :  { %42 = dma.hbm_to_vmem [thread:$0]  %s2135_s4, 1024, %s37_s12, [#allocation5], %s1901_s1, %s1901_s1, %s1902_s21  }
  0x23   :  { %1893 = dma.done.wait [#allocation3], 2048  }
  0x24   :  { %1894 = vsyncadd [#allocation3], 4294965248 }
  0x25   :  { %1895 = dma.done.wait [#allocation5], 1024  }
  0x26   :  { %1896 = vsyncadd [#allocation5], 4294966272  ;;  %v1903_v0 = vmov 0.0   ;;  %vm1904_vm0 = vmmov 0   ;;  %v53_v1 = vld [vmem:[#allocation2 + $0x8] sm:$0xff]  ;;  %v55_v2 = vld [vmem:[#allocation2 + $0x18] sm:$0xff]  ;;  %v70_v27 = vlaneseq }
  0x27   :  { %148 = vmatprep.mubr.f32.mxu0 %v1903_v0  ;;  %1664 = vmatprep.subr.mxu1 %v1903_v0  ;;  %v52_v3 = vld [vmem:[#allocation2] sm:$0xff]  ;;  %v1739_v4 = vpack.c.bf16 %v55_v2, %v53_v1  ;;  %v54_v5 = vld [vmem:[#allocation2 + $0x10] sm:$0xff]  ;;  %v57_v6 = vld [vmem:[#allocation2 + $0x28] sm:$0xff]  ;;  %vm80_vm1 = vcmask 523264   ;;  %s1905_s27 = smov 112   ;;  %vm163_vm2 = vcmask 64512  }
  0x28   :  { %1666 = vmatprep.mubr.msk.f32.mxu1 %vm1904_vm0, %v1903_v0  ;;  %v59_v7 = vld [vmem:[#allocation2 + $0x38] sm:$0xff]  ;;  %v1741_v8 = vpack.c.bf16 %v54_v5, %v52_v3  ;;  %v56_v10 = vld [vmem:[#allocation2 + $0x20] sm:$0xff]  ;;  %v58_v11 = vld [vmem:[#allocation2 + $0x30] sm:$0xff]  ;;  %v1995_v28 = vshrl.u32 %v70_v27, 7  ;;  %s1907_s28 = smov 32   ;;  %s1908_s29 = smov 72  }
  0x29   :  { %v1743_v9 = vpack.c.bf16 %v59_v7, %v57_v6  ;;  %v61_v12 = vld [vmem:[#allocation2 + $0x48] sm:$0xff]  ;;  %1740 = vmatprep.subr.bf16.mxu0 %v1739_v4  ;;  %v63_v13 = vld [vmem:[#allocation2 + $0x58] sm:$0xff]  ;;  %v1745_v14 = vpack.c.bf16 %v58_v11, %v56_v10  ;;  %v60_v16 = vld [vmem:[#allocation2 + $0x40] sm:$0xff]  ;;  %s1909_s30 = smov 64   ;;  %s1910_s7 = smov 40  }
  0x2a   :  { %1742 = vmatpush1.bf16.msra.mxu0 %v1741_v8  ;;  %v1747_v15 = vpack.c.bf16 %v63_v13, %v61_v12  ;;  %v62_v17 = vld [vmem:[#allocation2 + $0x50] sm:$0xff]  ;;  %v65_v18 = vld [vmem:[#allocation2 + $0x68] sm:$0xff]  ;;  %v67_v19 = vld [vmem:[#allocation2 + $0x78] sm:$0xff]  ;;  %v72_v29 = vsub.s32 0, %v1995_v28  ;;  %s1911_s9 = smov 96  }
  0x2b   :  { %1744 = vmatprep.subr.bf16.mxu0 %v1743_v9  ;;  %v1749_v20 = vpack.c.bf16 %v62_v17, %v60_v16  ;;  %v1751_v21 = vpack.c.bf16 %v67_v19, %v65_v18  ;;  %v64_v22 = vld [vmem:[#allocation2 + $0x60] sm:$0xff]  ;;  %v66_v23 = vld [vmem:[#allocation2 + $0x70] sm:$0xff]  ;;  %v442_v5 = vld [vmem:[#allocation4 + $0x8] sm:$0xff] }
  0x2c   :  { %v1753_v24 = vpack.c.bf16 %v66_v23, %v64_v22  ;;  %v51_v25 = vld [vmem:[%s2131_s0] sm:$0xff]  ;;  %v262_v48 = vld [vmem:[#allocation4] sm:$0xff] }
  0x2d   :  { %v1984_v26 = vld [vmem:[%s2134_s3] sm:$0xff]  ;;  %1665 = vmatpush3.msra.mxu1 %v262_v48 }
  0x2e   :  { %1746 = vmatpush1.bf16.msra.mxu0 %v1745_v14  ;;  %v2001_v30 = vld [vmem:[%s2133_s2] sm:$0x3]  ;;  %1669 = vmatprep.subr.mxu1 %v1903_v0  ;;  %s1906_s2 = smov 104  }
  0x2f   :  { %1748 = vmatprep.subr.bf16.mxu0 %v1747_v15  ;;  %v73_v31 = vrot.slane %v2001_v30, %v72_v29 }
  0x32   :  { %1750 = vmatpush1.bf16.msra.mxu0 %v1749_v20 }
  0x33   :  { %1752 = vmatprep.subr.bf16.mxu0 %v1751_v21 }
  0x36   :  { %1754 = vmatpush1.bf16.msra.mxu0 %v1753_v24 }
  0x37   :  { %1659 = vmatprep.subr.mxu0 %v1903_v0 }
  0x39   :  { %1602 = vmatmul.mubr.msk.f32.vlgmr.msra.gmra.mrb[0].mxu0 %vm80_vm1, %v51_v25  ;;  %v622_v25 = vld [vmem:[#allocation4 + $0x10] sm:$0xff] }
  0x3a   :  { %1660 = vmatpush3.msra.mxu0 %v1984_v26  ;;  %1661 = vmatprep.mubr.msk.f32.mxu0 %vm1904_vm0, %v1903_v0 }
  0x3b   :  { %1689 = vmatprep.subr.mxu0 %v1903_v0 }
  0x3d   :  { %1662 = vmatmul.mubr.f32.vlgmr.msra.gmra.mrb[2].mxu0 %v1903_v0 }
  0x3e   :  { %1690 = vmatpush3.msra.mxu0 %v1984_v26  ;;  %1691 = vmatprep.mubr.msk.f32.mxu0 %vm1904_vm0, %v1903_v0 }
  0x3f   :  { %1699 = vmatprep.subr.mxu0 %v1903_v0 }
 0x10c   :  { %v150_v32 = vpop.f32.mrb[0].mxu0 }
 0x10d   :  { %v2004_v33 = vpop.f32.mrb[1].mxu0  ;;  %v2006_v34 = vadd.f32 %v150_v32, %v73_v31 }
 0x110   :  { %v233_v35 = vpop.f32.mrb[2].mxu0 }
 0x111   :  { %v237_v36 = vadd.f32 %v233_v35, %v2006_v34  ;;  %v1663_v37 = vpop.f32.mrb[3].mxu0 }
 0x113   :  { %1785 = vtanh.f32 %v237_v36  ;;  %v1604_v39 = vmul.f32 -1.442695, %v237_v36 }
 0x115   :  { %1787 = vpow2.f32 %v1604_v39 }
 0x11d   :  { %v1786_v38 = vpop.eup %1785 }
 0x11e   :  { %247 = vrot.lane.b32.xlu0 %v1786_v38, %s1905_s27 }
 0x11f   :  { %v1788_v40 = vpop.eup %1787 }
 0x120   :  { %v241_v41 = vadd.f32 1.0, %v1788_v40 }
 0x122   :  { %1789 = vrcp.f32 %v241_v41 }
 0x12c   :  { %v1790_v42 = vpop.eup %1789 }
 0x12d   :  { %v245_v45 = vmul.f32 0.0, %v1790_v42 }
 0x190   :  { %v248_v43 = vpop.permute.xlu0 %247 }
 0x191   :  { %v250_v44 = vmul.f32 %v1790_v42, %v248_v43 }
 0x193   :  { %252 = vrot.lane.b32.xlu0 %v250_v44, %s1902_s21 }
 0x205   :  { %v253_v46 = vpop.permute.xlu0 %252 }
 0x206   :  { %v255_v47 = vadd.f32 %v253_v46, %v245_v45 }
 0x208   :  { %1791 = vtanh.f32 %v255_v47 }
 0x212   :  { %v1792_v49 = vpop.eup %1791 }
 0x213   :  { %258 = vrot.lane.b32.xlu1 %v1792_v49, %s1899_s8 }
 0x285   :  { %v259_v50 = vpop.permute.xlu1 %258 }
 0x286   :  { %v261_v51 = vmul.f32 %v1790_v42, %v259_v50  ;;  %v802_v50 = vld [vmem:[#allocation4 + $0x18] sm:$0xff] }
 0x288   :  { %264 = vrot.lane.b32.xlu1 %v261_v51, %s1906_s2 }
 0x2fa   :  { %v265_v52 = vpop.permute.xlu1 %264 }
 0x2fb   :  { %1667 = vmatmul.mubr.msk.f32.vlgmr.msra.gmra.mrb[0].mxu1 %vm163_vm2, %v265_v52 }
 0x2fc   :  { %1670 = vmatpush3.msra.mxu1 %v1984_v26  ;;  %1671 = vmatprep.mubr.msk.f32.mxu1 %vm1904_vm0, %v1903_v0 }
 0x2fd   :  { %1674 = vmatprep.subr.mxu1 %v1903_v0 }
 0x2ff   :  { %1672 = vmatmul.mubr.msk.f32.vlgmr.msra.gmra.mrb[2].mxu1 %vm163_vm2, %v265_v52 }
 0x300   :  { %1676 = vmatprep.mubr.msk.f32.mxu1 %vm1904_vm0, %v1903_v0  ;;  %1675 = vmatpush3.msra.mxu1 %v442_v5 }
 0x301   :  { %1679 = vmatprep.subr.mxu1 %v1903_v0 }
 0x3d2   :  { %v405_v53 = vpop.f32.mrb[2].mxu1 }
 0x3d3   :  { %410 = vrot.lane.b32.xlu0 %v405_v53, %s1907_s28  ;;  %v1673_v54 = vpop.f32.mrb[3].mxu1 }
 0x3d4   :  { %v76_v54 = vsub.s32 1, %v1995_v28 }
 0x3d7   :  { %422 = vrot.lane.b32.xlu0 %v255_v47, %s1907_s28 }
 0x445   :  { %v411_v55 = vpop.permute.xlu0 %410 }
 0x446   :  { %v413_v56 = vadd.f32 %v411_v55, %v2006_v34  ;;  %v77_v55 = vrot.slane %v2001_v30, %v76_v54 }
 0x448   :  { %1793 = vtanh.f32 %v413_v56  ;;  %v1607_v58 = vmul.f32 -1.442695, %v413_v56  ;;  %v2074_v56 = vadd.f32 %v2004_v33, %v77_v55 }
 0x449   :  { %v423_v1 = vpop.permute.xlu0 %422 }
 0x44a   :  { %1795 = vpow2.f32 %v1607_v58 }
 0x452   :  { %v1794_v57 = vpop.eup %1793 }
 0x453   :  { %427 = vrot.lane.b32.xlu1 %v1794_v57, %s1905_s27 }
 0x454   :  { %v1796_v59 = vpop.eup %1795 }
 0x455   :  { %v417_v60 = vadd.f32 1.0, %v1796_v59 }
 0x457   :  { %1797 = vrcp.f32 %v417_v60 }
 0x461   :  { %v1798_v61 = vpop.eup %1797 }
 0x462   :  { %v425_v2 = vmul.f32 %v1798_v61, %v423_v1 }
 0x4c5   :  { %v428_v62 = vpop.permute.xlu1 %427 }
 0x4c6   :  { %v430_v63 = vmul.f32 %v1798_v61, %v428_v62 }
 0x4c8   :  { %432 = vrot.lane.b32.xlu1 %v430_v63, %s1902_s21 }
 0x53a   :  { %v433_v3 = vpop.permute.xlu1 %432 }
 0x53b   :  { %v435_v4 = vadd.f32 %v433_v3, %v425_v2 }
 0x53d   :  { %1799 = vtanh.f32 %v435_v4 }
 0x547   :  { %v1800_v6 = vpop.eup %1799 }
 0x548   :  { %438 = vrot.lane.b32.xlu0 %v1800_v6, %s1899_s8  ;;  %v978_v6 = vld [vmem:[#allocation4 + $0x20] sm:$0xff] }
 0x5ba   :  { %v439_v7 = vpop.permute.xlu0 %438 }
 0x5bb   :  { %v441_v8 = vmul.f32 %v1798_v61, %v439_v7 }
 0x5bd   :  { %444 = vrot.lane.b32.xlu1 %v441_v8, %s1908_s29 }
 0x62f   :  { %v445_v9 = vpop.permute.xlu1 %444 }
 0x630   :  { %1677 = vmatmul.mubr.msk.f32.vlgmr.msra.gmra.mrb[0].mxu1 %vm163_vm2, %v445_v9 }
 0x631   :  { %1680 = vmatpush3.msra.mxu1 %v1984_v26  ;;  %1681 = vmatprep.mubr.msk.f32.mxu1 %vm1904_vm0, %v1903_v0 }
 0x632   :  { %1684 = vmatprep.subr.mxu1 %v1903_v0 }
 0x634   :  { %1682 = vmatmul.mubr.msk.f32.vlgmr.msra.gmra.mrb[4].mxu1 %vm163_vm2, %v445_v9 }
 0x635   :  { %1686 = vmatprep.mubr.msk.f32.mxu1 %vm1904_vm0, %v1903_v0  ;;  %1685 = vmatpush3.msra.mxu1 %v622_v25 }
 0x636   :  { %1694 = vmatprep.subr.mxu1 %v1903_v0 }
 0x707   :  { %v585_v10 = vpop.f32.mrb[4].mxu1 }
 0x708   :  { %590 = vrot.lane.b32.xlu0 %v585_v10, %s1909_s30  ;;  %v1683_v11 = vpop.f32.mrb[5].mxu1 }
 0x70c   :  { %602 = vrot.lane.b32.xlu0 %v435_v4, %s1907_s28 }
 0x77a   :  { %v591_v12 = vpop.permute.xlu0 %590 }
 0x77b   :  { %v593_v13 = vadd.f32 %v591_v12, %v2006_v34 }
 0x77d   :  { %1801 = vtanh.f32 %v593_v13  ;;  %v1610_v15 = vmul.f32 -1.442695, %v593_v13 }
 0x77e   :  { %v603_v21 = vpop.permute.xlu0 %602 }
 0x77f   :  { %1803 = vpow2.f32 %v1610_v15 }
 0x787   :  { %v1802_v14 = vpop.eup %1801 }
 0x788   :  { %607 = vrot.lane.b32.xlu1 %v1802_v14, %s1905_s27 }
 0x789   :  { %v1804_v16 = vpop.eup %1803 }
 0x78a   :  { %v597_v17 = vadd.f32 1.0, %v1804_v16 }
 0x78c   :  { %1805 = vrcp.f32 %v597_v17 }
 0x796   :  { %v1806_v18 = vpop.eup %1805 }
 0x797   :  { %v605_v22 = vmul.f32 %v1806_v18, %v603_v21 }
 0x7fa   :  { %v608_v19 = vpop.permute.xlu1 %607 }
 0x7fb   :  { %v610_v20 = vmul.f32 %v1806_v18, %v608_v19 }
 0x7fd   :  { %612 = vrot.lane.b32.xlu1 %v610_v20, %s1902_s21 }
 0x86f   :  { %v613_v23 = vpop.permute.xlu1 %612 }
 0x870   :  { %v615_v24 = vadd.f32 %v613_v23, %v605_v22 }
 0x872   :  { %1807 = vtanh.f32 %v615_v24 }
 0x87c   :  { %v1808_v27 = vpop.eup %1807 }
 0x87d   :  { %618 = vrot.lane.b32.xlu0 %v1808_v27, %s1899_s8  ;;  %v1158_v27 = vld [vmem:[#allocation4 + $0x28] sm:$0xff] }
 0x8ef   :  { %v619_v29 = vpop.permute.xlu0 %618 }
 0x8f0   :  { %v621_v31 = vmul.f32 %v1806_v18, %v619_v29 }
 0x8f2   :  { %624 = vrot.lane.b32.xlu1 %v621_v31, %s1910_s7 }
 0x964   :  { %v625_v32 = vpop.permute.xlu1 %624 }
 0x965   :  { %1687 = vmatmul.mubr.msk.f32.vlgmr.msra.gmra.mrb[0].mxu1 %vm163_vm2, %v625_v32  ;;  %1692 = vmatmul.mubr.msk.f32.vlgmr.msra.gmra.mrb[4].mxu0 %vm163_vm2, %v625_v32 }
 0x966   :  { %1700 = vmatpush3.msra.mxu0 %v1984_v26  ;;  %1701 = vmatprep.mubr.msk.f32.mxu0 %vm1904_vm0, %v1903_v0 }
 0x967   :  { %1696 = vmatprep.mubr.msk.f32.mxu1 %vm1904_vm0, %v1903_v0  ;;  %1709 = vmatprep.subr.mxu0 %v1903_v0 }
 0x968   :  { %1695 = vmatpush3.msra.mxu1 %v802_v50 }
 0x969   :  { %1704 = vmatprep.subr.mxu1 %v1903_v0 }
 0xa38   :  { %v765_v35 = vpop.f32.mrb[4].mxu0 }
 0xa39   :  { %770 = vrot.lane.b32.xlu0 %v765_v35, %s1911_s9  ;;  %v1693_v36 = vpop.f32.mrb[5].mxu0 }
 0xa3d   :  { %782 = vrot.lane.b32.xlu0 %v615_v24, %s1907_s28 }
 0xaab   :  { %v771_v37 = vpop.permute.xlu0 %770 }
 0xaac   :  { %v773_v38 = vadd.f32 %v771_v37, %v2006_v34 }
 0xaae   :  { %1809 = vtanh.f32 %v773_v38  ;;  %v1613_v40 = vmul.f32 -1.442695, %v773_v38 }
 0xaaf   :  { %v783_v46 = vpop.permute.xlu0 %782 }
 0xab0   :  { %1811 = vpow2.f32 %v1613_v40 }
 0xab8   :  { %v1810_v39 = vpop.eup %1809 }
 0xab9   :  { %787 = vrot.lane.b32.xlu1 %v1810_v39, %s1905_s27 }
 0xaba   :  { %v1812_v41 = vpop.eup %1811 }
 0xabb   :  { %v777_v42 = vadd.f32 1.0, %v1812_v41 }
 0xabd   :  { %1813 = vrcp.f32 %v777_v42 }
 0xac7   :  { %v1814_v43 = vpop.eup %1813 }
 0xac8   :  { %v785_v47 = vmul.f32 %v1814_v43, %v783_v46 }
 0xb2b   :  { %v788_v44 = vpop.permute.xlu1 %787 }
 0xb2c   :  { %v790_v45 = vmul.f32 %v1814_v43, %v788_v44 }
 0xb2e   :  { %792 = vrot.lane.b32.xlu1 %v790_v45, %s1902_s21 }
 0xba0   :  { %v793_v48 = vpop.permute.xlu1 %792 }
 0xba1   :  { %v795_v49 = vadd.f32 %v793_v48, %v785_v47 }
 0xba3   :  { %1815 = vtanh.f32 %v795_v49 }
 0xbad   :  { %v1816_v34 = vpop.eup %1815 }
 0xbae   :  { %798 = vrot.lane.b32.xlu0 %v1816_v34, %s1899_s8  ;;  %v1338_v34 = vld [vmem:[#allocation4 + $0x30] sm:$0xff] }
 0xc20   :  { %v799_v51 = vpop.permute.xlu0 %798 }
 0xc21   :  { %v801_v52 = vmul.f32 %v1814_v43, %v799_v51 }
 0xc23   :  { %804 = vrot.lane.b32.xlu1 %v801_v52, %s1902_s21 }
 0xc27   :  { %958 = vrot.lane.b32.xlu1 %v795_v49, %s1907_s28 }
 0xc95   :  { %v805_v53 = vpop.permute.xlu1 %804 }
 0xc96   :  { %1697 = vmatmul.mubr.msk.f32.vlgmr.msra.gmra.mrb[0].mxu1 %vm163_vm2, %v805_v53  ;;  %1702 = vmatmul.mubr.msk.f32.vlgmr.msra.gmra.mrb[6].mxu0 %vm163_vm2, %v805_v53 }
 0xc97   :  { %1710 = vmatpush3.msra.mxu0 %v1984_v26  ;;  %1711 = vmatprep.mubr.msk.f32.mxu0 %vm1904_vm0, %v1903_v0 }
 0xc98   :  { %1706 = vmatprep.mubr.msk.f32.mxu1 %vm1904_vm0, %v1903_v0  ;;  %1719 = vmatprep.subr.mxu0 %v1903_v0 }
 0xc99   :  { %v959_v30 = vpop.permute.xlu1 %958  ;;  %1705 = vmatpush3.msra.mxu1 %v978_v6  ;;  %v1603_v6 = vld [vmem:[%s2136_s5] ss:$0 sm:$0xff] }
 0xc9a   :  { %1714 = vmatprep.subr.mxu1 %v1903_v0 }
 0xd69   :  { %v945_v57 = vpop.f32.mrb[6].mxu0 }
 0xd6a   :  { %v949_v58 = vadd.f32 %v945_v57, %v2074_v56  ;;  %v1703_v59 = vpop.f32.mrb[7].mxu0 }
 0xd6c   :  { %1817 = vtanh.f32 %v949_v58  ;;  %v1616_v61 = vmul.f32 -1.442695, %v949_v58 }
 0xd6e   :  { %1819 = vpow2.f32 %v1616_v61 }
 0xd76   :  { %v1818_v60 = vpop.eup %1817 }
 0xd77   :  { %963 = vrot.lane.b32.xlu0 %v1818_v60, %s1905_s27 }
 0xd78   :  { %v1820_v62 = vpop.eup %1819 }
 0xd79   :  { %v953_v63 = vadd.f32 1.0, %v1820_v62 }
 0xd7b   :  { %1821 = vrcp.f32 %v953_v63 }
 0xd85   :  { %v1822_v1 = vpop.eup %1821 }
 0xd86   :  { %v961_v33 = vmul.f32 %v1822_v1, %v959_v30 }
 0xde9   :  { %v964_v28 = vpop.permute.xlu0 %963 }
 0xdea   :  { %v966_v2 = vmul.f32 %v1822_v1, %v964_v28 }
 0xdec   :  { %968 = vrot.lane.b32.xlu0 %v966_v2, %s1902_s21 }
 0xe5e   :  { %v969_v3 = vpop.permute.xlu0 %968 }
 0xe5f   :  { %v971_v4 = vadd.f32 %v969_v3, %v961_v33 }
 0xe61   :  { %1823 = vtanh.f32 %v971_v4 }
 0xe6b   :  { %v1824_v5 = vpop.eup %1823 }
 0xe6c   :  { %974 = vrot.lane.b32.xlu1 %v1824_v5, %s1899_s8 }
 0xede   :  { %v975_v7 = vpop.permute.xlu1 %974 }
 0xedf   :  { %v977_v8 = vmul.f32 %v1822_v1, %v975_v7 }
 0xee1   :  { %980 = vrot.lane.b32.xlu0 %v977_v8, %s1906_s2 }
 0xf53   :  { %v981_v9 = vpop.permute.xlu0 %980 }
 0xf54   :  { %1707 = vmatmul.mubr.msk.f32.vlgmr.msra.gmra.mrb[0].mxu1 %vm163_vm2, %v981_v9  ;;  %1712 = vmatmul.mubr.msk.f32.vlgmr.msra.gmra.mrb[8].mxu0 %vm163_vm2, %v981_v9 }
 0xf55   :  { %1720 = vmatpush3.msra.mxu0 %v1984_v26  ;;  %1721 = vmatprep.mubr.msk.f32.mxu0 %vm1904_vm0, %v1903_v0 }
 0xf56   :  { %1716 = vmatprep.mubr.msk.f32.mxu1 %vm1904_vm0, %v1903_v0  ;;  %1729 = vmatprep.subr.mxu0 %v1903_v0 }
 0xf57   :  { %1715 = vmatpush3.msra.mxu1 %v1158_v27 }
 0xf58   :  { %1724 = vmatprep.subr.mxu1 %v1903_v0 }
0x1027   :  { %v1121_v10 = vpop.f32.mrb[8].mxu0 }
0x1028   :  { %1126 = vrot.lane.b32.xlu1 %v1121_v10, %s1907_s28  ;;  %v1713_v11 = vpop.f32.mrb[9].mxu0 }
0x102c   :  { %1138 = vrot.lane.b32.xlu1 %v971_v4, %s1907_s28 }
0x109a   :  { %v1127_v12 = vpop.permute.xlu1 %1126 }
0x109b   :  { %v1129_v13 = vadd.f32 %v1127_v12, %v2074_v56 }
0x109d   :  { %1825 = vtanh.f32 %v1129_v13  ;;  %v1619_v15 = vmul.f32 -1.442695, %v1129_v13 }
0x109e   :  { %v1139_v21 = vpop.permute.xlu1 %1138 }
0x109f   :  { %1827 = vpow2.f32 %v1619_v15 }
0x10a7   :  { %v1826_v14 = vpop.eup %1825 }
0x10a8   :  { %1143 = vrot.lane.b32.xlu0 %v1826_v14, %s1905_s27 }
0x10a9   :  { %v1828_v16 = vpop.eup %1827 }
0x10aa   :  { %v1133_v17 = vadd.f32 1.0, %v1828_v16 }
0x10ac   :  { %1829 = vrcp.f32 %v1133_v17 }
0x10b6   :  { %v1830_v18 = vpop.eup %1829 }
0x10b7   :  { %v1141_v22 = vmul.f32 %v1830_v18, %v1139_v21 }
0x111a   :  { %v1144_v19 = vpop.permute.xlu0 %1143 }
0x111b   :  { %v1146_v20 = vmul.f32 %v1830_v18, %v1144_v19 }
0x111d   :  { %1148 = vrot.lane.b32.xlu0 %v1146_v20, %s1902_s21 }
0x118f   :  { %v1149_v23 = vpop.permute.xlu0 %1148 }
0x1190   :  { %v1151_v24 = vadd.f32 %v1149_v23, %v1141_v22 }
0x1192   :  { %1831 = vtanh.f32 %v1151_v24 }
0x119c   :  { %v1832_v25 = vpop.eup %1831 }
0x119d   :  { %1154 = vrot.lane.b32.xlu1 %v1832_v25, %s1899_s8 }
0x120f   :  { %v1155_v29 = vpop.permute.xlu1 %1154 }
0x1210   :  { %v1157_v31 = vmul.f32 %v1830_v18, %v1155_v29 }
0x1212   :  { %1160 = vrot.lane.b32.xlu0 %v1157_v31, %s1908_s29 }
0x1284   :  { %v1161_v32 = vpop.permute.xlu0 %1160 }
0x1285   :  { %1717 = vmatmul.mubr.msk.f32.vlgmr.msra.gmra.mrb[0].mxu1 %vm163_vm2, %v1161_v32  ;;  %1722 = vmatmul.mubr.msk.f32.vlgmr.msra.gmra.mrb[10].mxu0 %vm163_vm2, %v1161_v32 }
0x1286   :  { %1730 = vmatpush3.msra.mxu0 %v1984_v26  ;;  %1731 = vmatprep.mubr.msk.f32.mxu0 %vm1904_vm0, %v1903_v0 }
0x1287   :  { %1726 = vmatprep.mubr.msk.f32.mxu1 %vm1904_vm0, %v1903_v0  ;;  %1725 = vmatpush3.msra.mxu1 %v1338_v34 }
0x1288   :  { %1734 = vmatprep.subr.mxu1 %v1903_v0 }
0x1358   :  { %v1301_v35 = vpop.f32.mrb[10].mxu0 }
0x1359   :  { %1306 = vrot.lane.b32.xlu1 %v1301_v35, %s1909_s30  ;;  %v1723_v36 = vpop.f32.mrb[11].mxu0 }
0x135d   :  { %1318 = vrot.lane.b32.xlu1 %v1151_v24, %s1907_s28 }
0x13cb   :  { %v1307_v37 = vpop.permute.xlu1 %1306 }
0x13cc   :  { %v1309_v38 = vadd.f32 %v1307_v37, %v2074_v56 }
0x13ce   :  { %1833 = vtanh.f32 %v1309_v38  ;;  %v1622_v26 = vmul.f32 -1.442695, %v1309_v38 }
0x13cf   :  { %v1319_v45 = vpop.permute.xlu1 %1318 }
0x13d0   :  { %1835 = vpow2.f32 %v1622_v26 }
0x13d8   :  { %v1834_v39 = vpop.eup %1833 }
0x13d9   :  { %1323 = vrot.lane.b32.xlu0 %v1834_v39, %s1905_s27 }
0x13da   :  { %v1836_v40 = vpop.eup %1835 }
0x13db   :  { %v1313_v41 = vadd.f32 1.0, %v1836_v40 }
0x13dd   :  { %1837 = vrcp.f32 %v1313_v41 }
0x13e7   :  { %v1838_v42 = vpop.eup %1837 }
0x13e8   :  { %v1321_v46 = vmul.f32 %v1838_v42, %v1319_v45 }
0x144b   :  { %v1324_v43 = vpop.permute.xlu0 %1323 }
0x144c   :  { %v1326_v44 = vmul.f32 %v1838_v42, %v1324_v43 }
0x144e   :  { %1328 = vrot.lane.b32.xlu0 %v1326_v44, %s1902_s21 }
0x14c0   :  { %v1329_v47 = vpop.permute.xlu0 %1328 }
0x14c1   :  { %v1331_v48 = vadd.f32 %v1329_v47, %v1321_v46 }
0x14c3   :  { %1839 = vtanh.f32 %v1331_v48 }
0x14cd   :  { %v1840_v49 = vpop.eup %1839 }
0x14ce   :  { %1334 = vrot.lane.b32.xlu1 %v1840_v49, %s1899_s8 }
0x1540   :  { %v1335_v50 = vpop.permute.xlu1 %1334 }
0x1541   :  { %v1337_v51 = vmul.f32 %v1838_v42, %v1335_v50 }
0x1543   :  { %1340 = vrot.lane.b32.xlu0 %v1337_v51, %s1910_s7 }
0x15b5   :  { %v1341_v52 = vpop.permute.xlu0 %1340 }
0x15b6   :  { %1727 = vmatmul.mubr.msk.f32.vlgmr.msra.gmra.mrb[0].mxu1 %vm163_vm2, %v1341_v52  ;;  %1732 = vmatmul.mubr.msk.f32.vlgmr.msra.gmra.mrb[12].mxu0 %vm163_vm2, %v1341_v52 }
0x15b7   :  { %1736 = vmatprep.mubr.msk.f32.mxu1 %vm1904_vm0, %v1903_v0 }
0x1689   :  { %v1481_v53 = vpop.f32.mrb[12].mxu0 }
0x168a   :  { %1486 = vrot.lane.b32.xlu1 %v1481_v53, %s1911_s9  ;;  %v1733_v54 = vpop.f32.mrb[13].mxu0 }
0x168e   :  { %1498 = vrot.lane.b32.xlu1 %v1331_v48, %s1907_s28 }
0x16fc   :  { %v1487_v55 = vpop.permute.xlu1 %1486 }
0x16fd   :  { %v1489_v57 = vadd.f32 %v1487_v55, %v2074_v56  ;;  %v1518_v56 = vld [vmem:[#allocation4 + $0x38] sm:$0xff] }
0x16fe   :  { %1735 = vmatpush3.msra.mxu1 %v1518_v56 }
0x16ff   :  { %1841 = vtanh.f32 %v1489_v57  ;;  %v1625_v59 = vmul.f32 -1.442695, %v1489_v57 }
0x1700   :  { %v1499_v1 = vpop.permute.xlu1 %1498 }
0x1701   :  { %1843 = vpow2.f32 %v1625_v59 }
0x1709   :  { %v1842_v58 = vpop.eup %1841 }
0x170a   :  { %1503 = vrot.lane.b32.xlu0 %v1842_v58, %s1905_s27 }
0x170b   :  { %v1844_v60 = vpop.eup %1843 }
0x170c   :  { %v1493_v61 = vadd.f32 1.0, %v1844_v60 }
0x170e   :  { %1845 = vrcp.f32 %v1493_v61 }
0x1718   :  { %v1846_v62 = vpop.eup %1845 }
0x1719   :  { %v1501_v28 = vmul.f32 %v1846_v62, %v1499_v1 }
0x177c   :  { %v1504_v0 = vpop.permute.xlu0 %1503 }
0x177d   :  { %v1506_v63 = vmul.f32 %v1846_v62, %v1504_v0 }
0x177f   :  { %1508 = vrot.lane.b32.xlu0 %v1506_v63, %s1902_s21 }
0x17f1   :  { %v1509_v2 = vpop.permute.xlu0 %1508 }
0x17f2   :  { %v1511_v30 = vadd.f32 %v1509_v2, %v1501_v28 }
0x17f4   :  { %1847 = vtanh.f32 %v1511_v30 }
0x17fe   :  { %v1848_v33 = vpop.eup %1847 }
0x17ff   :  { %1514 = vrot.lane.b32.xlu1 %v1848_v33, %s1899_s8 }
0x1871   :  { %v1515_v3 = vpop.permute.xlu1 %1514 }
0x1872   :  { %v1517_v4 = vmul.f32 %v1846_v62, %v1515_v3 }
0x1874   :  { %1520 = vrot.lane.b32.xlu0 %v1517_v4, %s1902_s21 }
0x18e6   :  { %v1521_v5 = vpop.permute.xlu0 %1520 }
0x18e7   :  { %1737 = vmatmul.mubr.msk.f32.vlgmr.msra.gmra.mrb[0].mxu1 %vm163_vm2, %v1521_v5 }
0x19ba   :  { %v1590_v7 = vpop.f32.mrb[0].mxu1 }
0x19bb   :  { %v1755_v8 = vadd.f32 %v1603_v6, %v1590_v7  ;;  %v1738_v9 = vpop.f32.mrb[1].mxu1 }
0x19bd   :  { %1595 = vst [vmem:[%s2137_s6] sm:$0xff] %v1755_v8 }
0x19be   :  { %1600 = vsyncpa [#allocation3], 1 }
0x19bf   :  { %1601 = vsyncpa [#allocation5], 1 }

</bundles_post_ra>
